<compile_context>
chip_gen: v6e
topology: v6e:2x2x1
jax: 0.10.0
libtpu: 0.0.40
codegen_flags: <defaults>
</compile_context>

<pallas_src>
import functools

import jax
import jax.numpy as jnp
from jax.experimental import pallas as pl
from jax.experimental.pallas import tpu as pltpu

LANES = 128            # lane width (last dim of every tile)
MAX_TILE_ROWS = 1024   # (1024, 128) f32 tile = 512 KiB per input per pipeline buffer


def _cdiv(a, b):
    return -(-a // b)


def _round_up(a, b):
    return _cdiv(a, b) * b


def _pow_static(x, gamma, log_x=None):
    """x ** gamma for static python gamma, avoiding jnp.power's exp(g*log(x)) when possible."""
    g = float(gamma)
    if g == 0.0:
        return jnp.ones_like(x)
    if g == 1.0:
        return x
    if g == 2.0:
        return x * x
    if g == float(int(g)) and 0.0 < g <= 8.0:
        r = x
        for _ in range(int(g) - 1):          # unrolled integer power: pure VPU muls
            r = r * x
        return r
    lx = jnp.log(x) if log_x is None else log_x   # reuse an already-computed log
    return jnp.exp(g * lx)


def _focal_terms(pt, tgt, alpha, gamma, binary_targets):
    """Element-wise focal BCE loss (all f32). alpha/gamma are static Python floats."""
    a = float(alpha)
    if binary_targets:
        # Opt-in single-log rewrite; exactly equivalent only for hard {0,1} labels.
        p_t = tgt * pt + (1.0 - tgt) * (1.0 - pt)
        w = a * tgt + (1.0 - a) * (1.0 - tgt)
        return (-w) * _pow_static(1.0 - p_t, gamma) * jnp.log(p_t)
    log_p = jnp.log(pt)
    log_1mp = jnp.log(1.0 - pt)
    pow_pos = _pow_static(1.0 - pt, gamma, log_x=log_1mp)
    pow_neg = _pow_static(pt, gamma, log_x=log_p)
    return (-a) * pow_pos * tgt * log_p - (1.0 - a) * pow_neg * (1.0 - tgt) * log_1mp


# ---------------------------------------------------------------------------
# Sum-reduction kernel: streams (tile_rows, 128) tiles, folds each tile to one
# (8, 128) vreg, and accumulates into the resident output block.
# ---------------------------------------------------------------------------
def _focal_sum_kernel(x_ref, t_ref, out_ref, *,
                      alpha, gamma, binary_targets, total, tile_rows, needs_mask):
    i = pl.program_id(0)

    @pl.when(i == 0)
    def _():
        out_ref[...] = jnp.zeros_like(out_ref)

    pt = x_ref[...].astype(jnp.float32)            # (tile_rows, 128)
    tgt = t_ref[...].astype(jnp.float32)
    loss = _focal_terms(pt, tgt, alpha, gamma, binary_targets)

    def fold(v):
        # (tile_rows,128) -> (tile_rows//8, 8, 128) is layout-free; the sum over
        # axis 0 is pure VPU vreg adds (no cross-lane/XLU work).
        return v.reshape(tile_rows // 8, 8, LANES).sum(axis=0)

    if needs_mask:
        last = pl.num_programs(0) - 1

        @pl.when(i != last)                        # bulk steps: no mask arithmetic
        def _():
            out_ref[...] += fold(loss)

        @pl.when(i == last)                        # only the boundary step masks
        def _():
            rows_i = jax.lax.broadcasted_iota(jnp.int32, loss.shape, 0)
            lanes_i = jax.lax.broadcasted_iota(jnp.int32, loss.shape, 1)
            idx = (i * tile_rows + rows_i) * LANES + lanes_i
            # Select (not multiply) AFTER the loss: garbage tail rows may be NaN.
            out_ref[...] += fold(jnp.where(idx < total, loss, 0.0))
    else:
        out_ref[...] += fold(loss)


def _focal_loss_sum(x_flat, t_flat, alpha, gamma, binary_targets):
    """Sum of the element-wise focal loss over the first m (real) elements."""
    m = x_flat.shape[0]
    rows = _cdiv(m, LANES)
    lane_pad = rows * LANES - m
    if lane_pad:
        # Only when m is not lane-aligned: pad by <=127 elements so the lane-dense
        # reshape is legal (pt pad 0.5 keeps log finite; tail is masked in-kernel).
        x_flat = jnp.pad(x_flat, (0, lane_pad), constant_values=0.5)
        t_flat = jnp.pad(t_flat, (0, lane_pad), constant_values=0)
    x2 = x_flat.reshape(rows, LANES)
    t2 = t_flat.reshape(rows, LANES)

    tile_rows = min(MAX_TILE_ROWS, _round_up(rows, 8))
    num_blocks = _cdiv(rows, tile_rows)
    # Mask needed if the grid covers any element index >= m (lane pad or partial block).
    needs_mask = num_blocks * tile_rows * LANES != m

    kernel = functools.partial(
        _focal_sum_kernel, alpha=float(alpha), gamma=float(gamma),
        binary_targets=bool(binary_targets), total=m,
        tile_rows=tile_rows, needs_mask=bool(needs_mask))

    partial = pl.pallas_call(
        kernel,
        out_shape=jax.ShapeDtypeStruct((8, LANES), jnp.float32),
        grid_spec=pltpu.PrefetchScalarGridSpec(
            num_scalar_prefetch=0,
            grid=(num_blocks,),
            in_specs=[
                pl.BlockSpec((tile_rows, LANES), lambda i: (i, 0)),
                pl.BlockSpec((tile_rows, LANES), lambda i: (i, 0)),
            ],
            # Output block index is constant -> accumulator stays resident in VMEM
            # for the whole reduction, single HBM writeback at the end.
            out_specs=pl.BlockSpec((8, LANES), lambda i: (0, 0)),
        ),
        compiler_params=pltpu.CompilerParams(
            dimension_semantics=("arbitrary",)),
    )(x2, t2)
    # Tiny one-time cross-lane reduce over the (8, 128) per-lane partials.
    return jnp.sum(partial)


# ---------------------------------------------------------------------------
# Unreduced ('none') path: pure streaming map, output in the promoted input dtype.
# ---------------------------------------------------------------------------
def _focal_map_kernel(x_ref, t_ref, o_ref, *, alpha, gamma, binary_targets):
    pt = x_ref[...].astype(jnp.float32)
    tgt = t_ref[...].astype(jnp.float32)
    o_ref[...] = _focal_terms(pt, tgt, alpha, gamma, binary_targets).astype(o_ref.dtype)


def _focal_loss_map(x_flat, t_flat, alpha, gamma, binary_targets, out_dtype):
    m = x_flat.shape[0]
    rows = _cdiv(m, LANES)
    lane_pad = rows * LANES - m
    if lane_pad:
        x_flat = jnp.pad(x_flat, (0, lane_pad), constant_values=0.5)
        t_flat = jnp.pad(t_flat, (0, lane_pad), constant_values=0)
    x2 = x_flat.reshape(rows, LANES)
    t2 = t_flat.reshape(rows, LANES)

    tile_rows = min(MAX_TILE_ROWS, _round_up(rows, 8))
    num_blocks = _cdiv(rows, tile_rows)

    kernel = functools.partial(_focal_map_kernel, alpha=float(alpha),
                               gamma=float(gamma), binary_targets=bool(binary_targets))
    out = pl.pallas_call(
        kernel,
        out_shape=jax.ShapeDtypeStruct((rows, LANES), out_dtype),
        grid_spec=pltpu.PrefetchScalarGridSpec(
            num_scalar_prefetch=0,
            grid=(num_blocks,),
            in_specs=[
                pl.BlockSpec((tile_rows, LANES), lambda i: (i, 0)),
                pl.BlockSpec((tile_rows, LANES), lambda i: (i, 0)),
            ],
            out_specs=pl.BlockSpec((tile_rows, LANES), lambda i: (i, 0)),
        ),
        compiler_params=pltpu.CompilerParams(
            dimension_semantics=("parallel",)),
    )(x2, t2)
    return out.reshape(-1)[:m]


class BCEFocalLoss:
    """JAX/Pallas re-implementation of the PyTorch BCEFocalLoss forward."""

    def __init__(self, gamma=2, alpha=0.6, reduction='element_wise',
                 assume_binary_targets=False):
        self.gamma = gamma
        self.alpha = alpha
        self.reduction = reduction
        # Opt-in: single-log rewrite, only valid when targets are hard {0,1} labels.
        self.assume_binary_targets = assume_binary_targets

    def forward(self, _input, target):
        x = jnp.ravel(_input)
        t = jnp.ravel(target)
        n = x.shape[0]
        if self.reduction in ('element_wise', 'sum'):
            total = _focal_loss_sum(x, t, self.alpha, self.gamma,
                                    self.assume_binary_targets)
            if self.reduction == 'element_wise':
                return total / n
            return total
        # Any other reduction: the PyTorch module returns the unreduced loss tensor.
        out_dtype = jnp.result_type(_input, target)
        if not jnp.issubdtype(out_dtype, jnp.floating):
            out_dtype = jnp.float32
        return _focal_loss_map(x, t, self.alpha, self.gamma,
                               self.assume_binary_targets,
                               out_dtype).reshape(_input.shape)

    __call__ = forward


def _reference_bce_focal(pt, target, gamma=2, alpha=0.6, reduction='element_wise'):
    """Pure-JAX reference mirroring the PyTorch module (for validation)."""
    pt = pt.astype(jnp.float32)
    target = target.astype(jnp.float32)
    loss = (-alpha * (1 - pt) ** gamma * target * jnp.log(pt)
            - (1 - alpha) * pt ** gamma * (1 - target) * jnp.log(1 - pt))
    if reduction == 'element_wise':
        return jnp.mean(loss)
    if reduction == 'sum':
        return jnp.sum(loss)
    return loss


if __name__ == "__main__":
    key = jax.random.PRNGKey(0)
    k1, k2, k3, k4, k5, k6 = jax.random.split(key, 6)

    shape = (2, 4, 16, 16)
    probs = jax.nn.sigmoid(jax.random.normal(k1, shape, dtype=jnp.float32))
    target = (jax.random.uniform(k2, shape) > 0.5).astype(jnp.float32)

    # default reduction: mean over all elements
    loss_mean = jax.block_until_ready(BCEFocalLoss()(probs, target))
    ref_mean = jax.block_until_ready(_reference_bce_focal(probs, target))
    assert jnp.allclose(loss_mean, ref_mean, rtol=1e-5, atol=1e-6), (loss_mean, ref_mean)

    # sum reduction
    loss_sum = jax.block_until_ready(BCEFocalLoss(reduction='sum')(probs, target))
    ref_sum = jax.block_until_ready(_reference_bce_focal(probs, target, reduction='sum'))
    assert jnp.allclose(loss_sum, ref_sum, rtol=1e-5, atol=1e-4), (loss_sum, ref_sum)

    # unreduced (element-wise map) path
    loss_map = jax.block_until_ready(BCEFocalLoss(reduction='none')(probs, target))
    ref_map = jax.block_until_ready(_reference_bce_focal(probs, target, reduction='none'))
    assert loss_map.shape == shape
    assert jnp.allclose(loss_map, ref_map, rtol=1e-5, atol=1e-6), "elementwise mismatch"

    # irregular size exercising the <=127-element lane pad + in-kernel tail mask
    shape2 = (3, 5, 7, 11)
    probs2 = jax.nn.sigmoid(jax.random.normal(k3, shape2, dtype=jnp.float32))
    target2 = (jax.random.uniform(k4, shape2) > 0.5).astype(jnp.float32)
    loss2 = jax.block_until_ready(BCEFocalLoss()(probs2, target2))
    ref2 = jax.block_until_ready(_reference_bce_focal(probs2, target2))
    assert jnp.allclose(loss2, ref2, rtol=1e-5, atol=1e-6), (loss2, ref2)

    # medium size exercising a multi-block grid with a partial (masked) last block
    shape3 = (2, 8, 96, 96)   # 147456 elems -> 1152 rows -> 2 blocks of 1024 rows
    probs3 = jax.nn.sigmoid(jax.random.normal(k5, shape3, dtype=jnp.float32))
    target3 = (jax.random.uniform(k6, shape3) > 0.5).astype(jnp.float32)
    loss3 = jax.block_until_ready(BCEFocalLoss()(probs3, target3))
    ref3 = jax.block_until_ready(_reference_bce_focal(probs3, target3))
    assert jnp.allclose(loss3, ref3, rtol=1e-5, atol=1e-6), (loss3, ref3)

    # sum reduction on the medium tensor (checks multi-block accumulation)
    loss3s = jax.block_until_ready(BCEFocalLoss(reduction='sum')(probs3, target3))
    ref3s = jax.block_until_ready(_reference_bce_focal(probs3, target3, reduction='sum'))
    assert jnp.allclose(loss3s, ref3s, rtol=1e-5, atol=1e-2), (loss3s, ref3s)

    # opt-in single-log path (targets here are binary, so it must match the reference)
    loss_bin = jax.block_until_ready(
        BCEFocalLoss(assume_binary_targets=True)(probs, target))
    assert jnp.allclose(loss_bin, ref_mean, rtol=1e-5, atol=1e-6), (loss_bin, ref_mean)

    # non-default (integer) gamma exercising the unrolled-multiply power path
    loss_g3 = jax.block_until_ready(BCEFocalLoss(gamma=3)(probs, target))
    ref_g3 = jax.block_until_ready(_reference_bce_focal(probs, target, gamma=3))
    assert jnp.allclose(loss_g3, ref_g3, rtol=1e-5, atol=1e-6), (loss_g3, ref_g3)

    print("KERNEL_OK")
</pallas_src>

<mosaic_0001>
module attributes {stable_mosaic.version = 11 : i64} {
  func.func @_focal_sum_kernel(%arg0: i32, %arg1: memref<16x128xf32, #tpu.memory_space<vmem>>, %arg2: memref<16x128xf32, #tpu.memory_space<vmem>>, %arg3: memref<8x128xf32, #tpu.memory_space<vmem>>) attributes {dimension_semantics = [#tpu.dimension_semantics<arbitrary>], iteration_bounds = array<i64: 1>, scalar_prefetch = 0 : i64, scratch_operands = 0 : i64, tpu.core_type = #tpu.core_type<tc>, window_params = [{transform_indices = @transform_0, window_bounds = array<i64: 16, 128>}, {transform_indices = @transform_1, window_bounds = array<i64: 16, 128>}, {pipeline_mode = #tpu.pipeline_mode<synchronous>, transform_indices = @transform_2, window_bounds = array<i64: 8, 128>}]} {
    %c0_i32 = arith.constant 0 : i32
    %0 = arith.cmpi eq, %arg0, %c0_i32 : i32
    %1 = arith.extui %0 : i1 to i32
    %c0_i32_0 = arith.constant 0 : i32
    %2 = arith.cmpi ne, %1, %c0_i32_0 : i32
    scf.if %2 {
      %cst_13 = arith.constant 0.000000e+00 : f32
      %29 = vector.broadcast %cst_13 : f32 to vector<8x128xf32>
      %c0_14 = arith.constant 0 : index
      %c0_15 = arith.constant 0 : index
      %30 = vector.load %arg3[%c0_14, %c0_15] : memref<8x128xf32, #tpu.memory_space<vmem>>, vector<8x128xf32>
      tpu.vector_store %arg3[%c0_14, %c0_15], %29 {strides = array<i32>} : memref<8x128xf32, #tpu.memory_space<vmem>>, vector<8x128xf32>,
    } else {
    }
    %c0 = arith.constant 0 : index
    %c0_1 = arith.constant 0 : index
    %3 = vector.load %arg1[%c0, %c0_1] : memref<16x128xf32, #tpu.memory_space<vmem>>, vector<16x128xf32>
    %c0_2 = arith.constant 0 : index
    %c0_3 = arith.constant 0 : index
    %4 = vector.load %arg2[%c0_2, %c0_3] : memref<16x128xf32, #tpu.memory_space<vmem>>, vector<16x128xf32>
    %5 = math.log %3 : vector<16x128xf32>
    %cst = arith.constant 1.000000e+00 : f32
    %6 = vector.broadcast %cst : f32 to vector<16x128xf32>
    %7 = arith.subf %6, %3 : vector<16x128xf32>
    %8 = math.log %7 : vector<16x128xf32>
    %cst_4 = arith.constant 1.000000e+00 : f32
    %9 = vector.broadcast %cst_4 : f32 to vector<16x128xf32>
    %10 = arith.subf %9, %3 : vector<16x128xf32>
    %11 = arith.mulf %10, %10 : vector<16x128xf32>
    %12 = arith.mulf %3, %3 : vector<16x128xf32>
    %cst_5 = arith.constant -6.000000e-01 : f32
    %13 = vector.broadcast %cst_5 : f32 to vector<16x128xf32>
    %14 = arith.mulf %13, %11 : vector<16x128xf32>
    %15 = arith.mulf %14, %4 : vector<16x128xf32>
    %16 = arith.mulf %15, %5 : vector<16x128xf32>
    %cst_6 = arith.constant 4.000000e-01 : f32
    %17 = vector.broadcast %cst_6 : f32 to vector<16x128xf32>
    %18 = arith.mulf %17, %12 : vector<16x128xf32>
    %cst_7 = arith.constant 1.000000e+00 : f32
    %19 = vector.broadcast %cst_7 : f32 to vector<16x128xf32>
    %20 = arith.subf %19, %4 : vector<16x128xf32>
    %21 = arith.mulf %18, %20 : vector<16x128xf32>
    %22 = arith.mulf %21, %8 : vector<16x128xf32>
    %23 = arith.subf %16, %22 : vector<16x128xf32>
    %c0_8 = arith.constant 0 : index
    %c0_9 = arith.constant 0 : index
    %24 = vector.load %arg3[%c0_8, %c0_9] : memref<8x128xf32, #tpu.memory_space<vmem>>, vector<8x128xf32>
    %25 = vector.shape_cast %23 : vector<16x128xf32> to vector<2x8x128xf32>
    %cst_10 = arith.constant dense<0.000000e+00> : vector<8x128xf32>
    %26 = vector.multi_reduction <add>, %25, %cst_10 [0] : vector<2x8x128xf32> to vector<8x128xf32>
    %27 = arith.addf %24, %26 : vector<8x128xf32>
    %c0_11 = arith.constant 0 : index
    %c0_12 = arith.constant 0 : index
    %28 = vector.load %arg3[%c0_11, %c0_12] : memref<8x128xf32, #tpu.memory_space<vmem>>, vector<8x128xf32>
    tpu.vector_store %arg3[%c0_11, %c0_12], %27 {strides = array<i32>} : memref<8x128xf32, #tpu.memory_space<vmem>>, vector<8x128xf32>,
    return
  }
  func.func @transform_0(%arg0: i32) -> (i32, i32) {
    %c0_i32 = arith.constant 0 : i32
    %c0_i32_0 = arith.constant 0 : i32
    return %arg0, %c0_i32 : i32, i32
  }
  func.func @transform_1(%arg0: i32) -> (i32, i32) {
    %c0_i32 = arith.constant 0 : i32
    %c0_i32_0 = arith.constant 0 : i32
    return %arg0, %c0_i32 : i32, i32
  }
  func.func @transform_2(%arg0: i32) -> (i32, i32) {
    %c0_i32 = arith.constant 0 : i32
    %c0_i32_0 = arith.constant 0 : i32
    %c0_i32_1 = arith.constant 0 : i32
    return %c0_i32, %c0_i32_0 : i32, i32
  }
}

</mosaic_0001>

<bundles_post_ra>
// kernel: tpu_custom_call.1
= control target key start
LH: loop header
LB: loop body
LE: loop exit
PB: predicated region body
PF: predicated region fallthrough
CT: control target
= control target key end

     0   :  { %7 = vsyncpa [#allocation3], 0  ;;  %s208_s0 = inlined_call_operand.hbm [shape: f32[16,128], index: 0, kind: input, shape index: {}]   ;;  %s209_s1 = inlined_call_operand.hbm [shape: f32[16,128], index: 1, kind: input, shape index: {}]   ;;  %s210_s2 = inlined_call_operand.hbm [shape: f32[8,128], index: 2, kind: output, shape index: {}]  }
   0x1   :  { %8 = vsyncpa [#allocation6], 0 }
   0x2   :  { %9 = vsyncpa [#allocation4], 0  ;;  %s179_s9 = smov [#allocation2]  }
   0x3   :  { %s15_s10 = sshll.u32 %s179_s9, 4  ;;  %s16_s10 = int_to_ptr.vmem [resolvable:$true] %s15_s10 }
   0x4   :  { %s121_s11 = scalar_lea.vmem %s16_s10, 256  ;;  %p126_p1 = scmp.lt.s32.totalorder %s16_s10, %s16_s10 }
   0x5   :  { %p122_p0 = scmp.ne.s32.totalorder %s16_s10, %s121_s11  ;;  %p127_p2 = scmp.lt.s32.totalorder %s121_s11, %s121_s11 }
   0x7   :  { %p128_p3 = por %p127_p2, %p126_p1 }
   0x9   :  { %p129_p4 = pnand %p128_p3, %p122_p0 }
   0xb   :  { %132 = shalt.err (!%p129_p4)
}
   0xc   :  { %s180_s12 = smov 128   ;;  %s181_s13 = smov 8  }
   0xd   :  { %21 = dma.hbm_to_vmem [thread:$0]  %s208_s0, 256, %s16_s10, [#allocation3], %s180_s12, %s180_s12, %s181_s13  }
   0xe   :  { %s182_s16 = smov [#allocation5]  }
   0xf   :  { %s27_s17 = sshll.u32 %s182_s16, 4  ;;  %s28_s17 = int_to_ptr.vmem [resolvable:$true] %s27_s17 }
  0x10   :  { %s141_s18 = scalar_lea.vmem %s28_s17, 256  ;;  %p146_p6 = scmp.lt.s32.totalorder %s28_s17, %s28_s17 }
  0x11   :  { %p142_p5 = scmp.ne.s32.totalorder %s28_s17, %s141_s18  ;;  %p147_p7 = scmp.lt.s32.totalorder %s141_s18, %s141_s18 }
  0x13   :  { %p148_p8 = por %p147_p7, %p146_p6 }
  0x15   :  { %p149_p9 = pnand %p148_p8, %p142_p5 }
  0x17   :  { %152 = shalt.err (!%p149_p9)
}
  0x18   :  { %33 = dma.hbm_to_vmem [thread:$0]  %s209_s1, 256, %s28_s17, [#allocation6], %s180_s12, %s180_s12, %s181_s13  }
  0x19   :  { %173 = dma.done.wait [#allocation3], 256  }
  0x1a   :  { %174 = vsyncadd [#allocation3], 4294967040 }
  0x1b   :  { %175 = dma.done.wait [#allocation6], 256  }
  0x1c   :  { %176 = vsyncadd [#allocation6], 4294967040  ;;  %v45_v0 = vld [vmem:[#allocation2] sm:$0xff]  ;;  %v46_v1 = vld [vmem:[#allocation2 + $0x8] sm:$0xff]  ;;  %s183_s0 = smov [#allocation7]  }
  0x1d   :  { %105 = vlog2.f32 %v45_v0  ;;  %v53_v2 = vsub.f32 1.0, %v45_v0  ;;  %v54_v3 = vsub.f32 1.0, %v46_v1  ;;  %v61_v6 = vmul.f32 %v45_v0, %v45_v0  ;;  %v47_v7 = vld [vmem:[#allocation5] sm:$0xff]  ;;  %v48_v9 = vld [vmem:[#allocation5 + $0x8] sm:$0xff]  ;;  %s89_s1 = sshll.u32 %s183_s0, 4  ;;  %s90_s1 = int_to_ptr.vmem [resolvable:$true] %s89_s1 }
  0x1e   :  { %107 = vlog2.f32 %v46_v1  ;;  %v62_v8 = vmul.f32 %v46_v1, %v46_v1  ;;  %v71_v13 = vsub.f32 1.0, %v47_v7  ;;  %v72_v15 = vsub.f32 1.0, %v48_v9  ;;  %s153_s21 = scalar_lea.vmem %s90_s1, 128  ;;  %p158_p11 = scmp.lt.s32.totalorder %s90_s1, %s90_s1 }
  0x1f   :  { %109 = vlog2.f32 %v53_v2  ;;  %v59_v4 = vmul.f32 %v53_v2, %v53_v2  ;;  %v60_v5 = vmul.f32 %v54_v3, %v54_v3  ;;  %v69_v12 = vmul.f32 0.4, %v61_v6  ;;  %p154_p10 = scmp.ne.s32.totalorder %s90_s1, %s153_s21  ;;  %p159_p12 = scmp.lt.s32.totalorder %s153_s21, %s153_s21 }
  0x20   :  { %111 = vlog2.f32 %v54_v3  ;;  %v70_v14 = vmul.f32 0.4, %v62_v8 }
  0x21   :  { %v63_v10 = vmul.f32 -0.6, %v59_v4  ;;  %v64_v11 = vmul.f32 -0.6, %v60_v5  ;;  %v73_v21 = vmul.f32 %v71_v13, %v69_v12  ;;  %p160_p13 = por %p159_p12, %p158_p11 }
  0x22   :  { %v74_v24 = vmul.f32 %v72_v15, %v70_v14 }
  0x23   :  { %v65_v16 = vmul.f32 %v63_v10, %v47_v7  ;;  %v66_v18 = vmul.f32 %v64_v11, %v48_v9  ;;  %p161_p0 = pnand %p160_p13, %p154_p10 }
  0x2a   :  { %v106_v17 = vpop.eup %105 }
  0x2b   :  { %v108_v19 = vpop.eup %107  ;;  %v50_v20 = vmul.f32 0.6931472, %v106_v17 }
  0x2c   :  { %v110_v22 = vpop.eup %109  ;;  %v52_v23 = vmul.f32 0.6931472, %v108_v19 }
  0x2d   :  { %v112_v25 = vpop.eup %111  ;;  %v56_v26 = vmul.f32 0.6931472, %v110_v22  ;;  %v67_v27 = vmul.f32 %v65_v16, %v50_v20 }
  0x2e   :  { %v58_v28 = vmul.f32 0.6931472, %v112_v25  ;;  %v68_v29 = vmul.f32 %v66_v18, %v52_v23 }
  0x2f   :  { %v75_v30 = vmul.f32 %v73_v21, %v56_v26 }
  0x30   :  { %v76_v31 = vmul.f32 %v74_v24, %v58_v28 }
  0x31   :  { %v77_v32 = vsub.f32 %v67_v27, %v75_v30 }
  0x32   :  { %v78_v33 = vsub.f32 %v68_v29, %v76_v31 }
  0x34   :  { %v80_v34 = vadd.f32 %v78_v33, %v77_v32 }
  0x36   :  { %82 = vst [vmem:[#allocation7] sm:$0xff] %v80_v34 }
  0x37   :  { %164 = shalt.err (!%p161_p0)
}
  0x38   :  { %92 = dma.vmem_to_hbm [thread:$0]  %s90_s1, 128, %s210_s2, [#allocation4]  }
  0x39   :  { %177 = dma.done.wait [#allocation4], 128  }
  0x3a   :  { %178 = vsyncadd [#allocation4], 4294967168 }
  0x3b   :  { %96 = vsyncpa [#allocation3], 1 }
  0x3c   :  { %97 = vsyncpa [#allocation6], 1 }
  0x3d   :  { %98 = vsyncpa [#allocation4], 1 }

</bundles_post_ra>
